<compile_context>
chip_gen: v7x
topology: tpu7x:2x2x1
jax: 0.10.0
libtpu: 0.0.40
codegen_flags: <defaults>
</compile_context>

<pallas_src>
from functools import partial

import numpy as np
import jax
import jax.numpy as jnp
from jax.experimental import pallas as pl
from jax.experimental.pallas import tpu as pltpu


def _make_downsample_kernel(w, s, D):
    """Kernel for one (window_size, step_size) config.

    x_ref block: (1, 5, s, n_chunks) with x_ref[0, c, r, q] == x[c, q*s + r]
    o_ref block: (1, 5, D), rows = (open, high, low, close, vol), f32.
    """
    m = -(-w // s)        # ceil(w/s): chunks spanned by one window
    full = w // s         # fully covered chunks
    rem = w % s           # rows used from the trailing partial chunk (if any)

    def kernel(x_ref, o_ref):
        f32 = jnp.float32
        max_acc = None
        min_acc = None
        # Static unrolled loop over the (few) chunks a window spans: each
        # iteration is one contiguous lane-slice + one sublane reduction.
        for q in range(m):
            rmax = s if q < full else rem
            sl = x_ref[0, :, 0:rmax, q:q + D].astype(f32)          # (5, rmax, D)
            mx = jnp.max(sl, axis=1)                               # (5, D)
            mn = jnp.min(sl, axis=1)                               # (5, D)
            max_acc = mx if max_acc is None else jnp.maximum(max_acc, mx)
            min_acc = mn if min_acc is None else jnp.minimum(min_acc, mn)

        open_ = x_ref[0, 0, 0, 0:D].astype(f32)                    # x[0, d*s]
        q_last, r_last = (w - 1) // s, (w - 1) % s
        close_ = x_ref[0, 3, r_last, q_last:q_last + D].astype(f32)  # x[3, d*s+w-1]
        high_ = max_acc[1]
        low_ = min_acc[2]
        vol_ = max_acc[4]

        out = jnp.concatenate(
            [open_[None, :], high_[None, :], low_[None, :],
             close_[None, :], vol_[None, :]], axis=0)              # (5, D)
        o_ref[0] = out                                             # single store

    return kernel


@partial(jax.jit, static_argnums=(1, 2))
def _downsample_one_config(x, w, s):
    """x: (B, C>=5, L) -> (B, 1, 5, D) for one (window, step) config."""
    B, C, L = x.shape
    assert C >= 5, 'DownSampling expects at least 5 channels (OHLCV)'
    assert L >= w, 'sequence shorter than window size'
    D = (L - w) // s + 1
    n_chunks = -(-L // s)
    L_pad = n_chunks * s

    xs = x[:, :5, :].astype(jnp.float32)
    if L_pad != L:
        # Padded tail positions (>= L) never fall inside any valid window
        # (max index touched is (D-1)*s + w - 1 <= L - 1), so zeros are fine.
        xs = jnp.pad(xs, ((0, 0), (0, 0), (0, L_pad - L)))
    # Lane-dense prep (fuses with the pad in XLA):
    # xt[b, c, r, q] = x[b, c, q*s + r]; the output axis D lives on lanes.
    xt = xs.reshape(B, 5, n_chunks, s).transpose(0, 1, 3, 2)       # (B, 5, s, n_chunks)

    out = pl.pallas_call(
        _make_downsample_kernel(w, s, D),
        out_shape=jax.ShapeDtypeStruct((B, 5, D), jnp.float32),
        grid=(B,),
        in_specs=[pl.BlockSpec((1, 5, s, n_chunks), lambda b: (b, 0, 0, 0))],
        out_specs=pl.BlockSpec((1, 5, D), lambda b: (b, 0, 0)),
        compiler_params=pltpu.CompilerParams(
            dimension_semantics=("parallel",),
            vmem_limit_bytes=32 * 1024 * 1024),
    )(xt)
    return out[:, None, :, :]                  # (B, 1, 5, D) == torch unsqueeze(dim=1)


class DownSampling:
    """JAX/Pallas port of the PyTorch DownSampling module (forward pass only)."""

    def __init__(self, window_sizes, step_sizes, method='mean', device=None):
        if isinstance(window_sizes, int):
            window_sizes = [window_sizes]
        if isinstance(step_sizes, int):
            step_sizes = [step_sizes]
        assert len(step_sizes) == len(window_sizes), \
            'window_sizes and step_sizes should have the same length'
        self.window_sizes = [int(w) for w in window_sizes]
        self.step_sizes = [int(s) for s in step_sizes]
        self.n_window = len(self.window_sizes)
        # `method` and `device` kept for signature parity; unused (as in torch).

    def __call__(self, x):
        if x.ndim == 2:
            x = x[None, :, :]                  # matches torch x.view((1, *x.shape))
        assert x.ndim == 3, 'Input data must be 2 or 3 dimensional'
        return [_downsample_one_config(x, w, s)
                for w, s in zip(self.window_sizes, self.step_sizes)]


def _reference(xnp, w, s):
    """Pure-numpy replica of torch unfold-based transform_one_sample/forward."""
    B, C, L = xnp.shape
    D = (L - w) // s + 1
    idx = np.arange(D)[:, None] * s + np.arange(w)[None, :]
    win = xnp[:, :5, :][:, :, idx]             # (B, 5, D, w)
    open_ = win[:, 0, :, 0]
    high = win[:, 1].max(axis=-1)
    low = win[:, 2].min(axis=-1)
    close = win[:, 3, :, -1]
    vol = win[:, 4].max(axis=-1)
    out = np.stack([open_, high, low, close, vol], axis=1).astype(np.float32)
    return out[:, None, :, :]                  # (B, 1, 5, D)


if __name__ == "__main__":
    key = jax.random.PRNGKey(0)
    B, C, L = 2, 5, 64
    x = jax.random.normal(key, (B, C, L), dtype=jnp.float32)

    # Exercises: step | window, step ∤ window, and the L % step != 0 pad path.
    window_sizes = [4, 6, 5]
    step_sizes = [2, 4, 3]
    model = DownSampling(window_sizes, step_sizes)

    outs = model(x)
    outs = [jax.block_until_ready(o) for o in outs]

    xnp = np.asarray(x)
    for o, w, s in zip(outs, window_sizes, step_sizes):
        ref = _reference(xnp, w, s)
        assert o.shape == ref.shape, (o.shape, ref.shape)
        assert np.allclose(np.asarray(o), ref, atol=1e-6, rtol=1e-6), \
            f'mismatch for window={w} step={s}'

    # 2D-input path (torch: x.view((1, *x.shape)))
    out2d = [jax.block_until_ready(o) for o in model(x[0])]
    for o, w, s in zip(out2d, window_sizes, step_sizes):
        assert o.shape == (1, 1, 5, (L - w) // s + 1), o.shape

    print("KERNEL_OK")
</pallas_src>

<mosaic_0001>
module attributes {stable_mosaic.version = 11 : i64} {
  func.func @kernel(%arg0: i32, %arg1: memref<1x5x2x32xf32, #tpu.memory_space<vmem>>, %arg2: memref<1x5x31xf32, #tpu.memory_space<vmem>>) attributes {dimension_semantics = [#tpu.dimension_semantics<parallel>], iteration_bounds = array<i64: 2>, scalar_prefetch = 0 : i64, scratch_operands = 0 : i64, tpu.core_type = #tpu.core_type<tc>, window_params = [{transform_indices = @transform_0, window_bounds = array<i64: 1, 5, 2, 32>}, {transform_indices = @transform_1, window_bounds = array<i64: 1, 5, 31>}]} {
    %c0 = arith.constant 0 : index
    %c0_0 = arith.constant 0 : index
    %c0_1 = arith.constant 0 : index
    %c0_2 = arith.constant 0 : index
    %0 = vector.load %arg1[%c0, %c0_0, %c0_1, %c0_2] : memref<1x5x2x32xf32, #tpu.memory_space<vmem>>, vector<1x5x2x31xf32>
    %1 = vector.shape_cast %0 : vector<1x5x2x31xf32> to vector<5x2x31xf32>
    %cst = arith.constant dense<0xFF800000> : vector<5x31xf32>
    %2 = vector.multi_reduction <maximumf>, %1, %cst [1] : vector<5x2x31xf32> to vector<5x31xf32>
    %cst_3 = arith.constant dense<0x7F800000> : vector<5x31xf32>
    %3 = vector.multi_reduction <minimumf>, %1, %cst_3 [1] : vector<5x2x31xf32> to vector<5x31xf32>
    %c0_4 = arith.constant 0 : index
    %c0_5 = arith.constant 0 : index
    %c0_6 = arith.constant 0 : index
    %c1 = arith.constant 1 : index
    %4 = vector.load %arg1[%c0_4, %c0_5, %c0_6, %c1] : memref<1x5x2x32xf32, #tpu.memory_space<vmem>>, vector<1x5x2x31xf32>
    %5 = vector.shape_cast %4 : vector<1x5x2x31xf32> to vector<5x2x31xf32>
    %cst_7 = arith.constant dense<0xFF800000> : vector<5x31xf32>
    %6 = vector.multi_reduction <maximumf>, %5, %cst_7 [1] : vector<5x2x31xf32> to vector<5x31xf32>
    %cst_8 = arith.constant dense<0x7F800000> : vector<5x31xf32>
    %7 = vector.multi_reduction <minimumf>, %5, %cst_8 [1] : vector<5x2x31xf32> to vector<5x31xf32>
    %8 = arith.maximumf %2, %6 : vector<5x31xf32>
    %9 = arith.minimumf %3, %7 : vector<5x31xf32>
    %c0_9 = arith.constant 0 : index
    %c0_10 = arith.constant 0 : index
    %c0_11 = arith.constant 0 : index
    %c0_12 = arith.constant 0 : index
    %10 = vector.load %arg1[%c0_9, %c0_10, %c0_11, %c0_12] : memref<1x5x2x32xf32, #tpu.memory_space<vmem>>, vector<1x1x1x31xf32>
    %11 = vector.shape_cast %10 : vector<1x1x1x31xf32> to vector<31xf32>
    %c0_13 = arith.constant 0 : index
    %c3 = arith.constant 3 : index
    %c1_14 = arith.constant 1 : index
    %c1_15 = arith.constant 1 : index
    %12 = vector.load %arg1[%c0_13, %c3, %c1_14, %c1_15] : memref<1x5x2x32xf32, #tpu.memory_space<vmem>>, vector<1x1x1x31xf32>
    %13 = vector.shape_cast %12 : vector<1x1x1x31xf32> to vector<31xf32>
    %14 = vector.extract_strided_slice %8 {offsets = [1, 0], sizes = [1, 31], strides = [1, 1]} : vector<5x31xf32> to vector<1x31xf32>
    %15 = vector.shape_cast %14 : vector<1x31xf32> to vector<31xf32>
    %16 = vector.extract_strided_slice %9 {offsets = [2, 0], sizes = [1, 31], strides = [1, 1]} : vector<5x31xf32> to vector<1x31xf32>
    %17 = vector.shape_cast %16 : vector<1x31xf32> to vector<31xf32>
    %18 = vector.extract_strided_slice %8 {offsets = [4, 0], sizes = [1, 31], strides = [1, 1]} : vector<5x31xf32> to vector<1x31xf32>
    %19 = vector.shape_cast %18 : vector<1x31xf32> to vector<31xf32>
    %20 = vector.shape_cast %11 : vector<31xf32> to vector<1x31xf32>
    %21 = vector.shape_cast %15 : vector<31xf32> to vector<1x31xf32>
    %22 = vector.shape_cast %17 : vector<31xf32> to vector<1x31xf32>
    %23 = vector.shape_cast %13 : vector<31xf32> to vector<1x31xf32>
    %24 = vector.shape_cast %19 : vector<31xf32> to vector<1x31xf32>
    %25 = tpu.concatenate %20, %21, %22, %23, %24 in 0 : vector<1x31xf32>, vector<1x31xf32>, vector<1x31xf32>, vector<1x31xf32>, vector<1x31xf32> -> vector<5x31xf32>
    %c0_16 = arith.constant 0 : index
    %c0_17 = arith.constant 0 : index
    %c0_18 = arith.constant 0 : index
    %26 = vector.load %arg2[%c0_16, %c0_17, %c0_18] : memref<1x5x31xf32, #tpu.memory_space<vmem>>, vector<1x5x31xf32>
    %27 = vector.shape_cast %26 : vector<1x5x31xf32> to vector<5x31xf32>
    %28 = vector.shape_cast %25 : vector<5x31xf32> to vector<1x5x31xf32>
    tpu.vector_store %arg2[%c0_16, %c0_17, %c0_18], %28 {strides = array<i32>} : memref<1x5x31xf32, #tpu.memory_space<vmem>>, vector<1x5x31xf32>,
    return
  }
  func.func @transform_0(%arg0: i32) -> (i32, i32, i32, i32) {
    %c0_i32 = arith.constant 0 : i32
    %c0_i32_0 = arith.constant 0 : i32
    %c0_i32_1 = arith.constant 0 : i32
    %c0_i32_2 = arith.constant 0 : i32
    return %arg0, %c0_i32, %c0_i32_0, %c0_i32_1 : i32, i32, i32, i32
  }
  func.func @transform_1(%arg0: i32) -> (i32, i32, i32) {
    %c0_i32 = arith.constant 0 : i32
    %c0_i32_0 = arith.constant 0 : i32
    %c0_i32_1 = arith.constant 0 : i32
    return %arg0, %c0_i32, %c0_i32_0 : i32, i32, i32
  }
}

</mosaic_0001>

<bundles_post_ra>
// kernel: _downsample_one_config.1
= control target key start
LH: loop header
LB: loop body
LE: loop exit
PB: predicated region body
PF: predicated region fallthrough
CT: control target
= control target key end

     0   :  { %s296_s6 = smov 0   ;;  %s324_s0 = inlined_call_operand.vmem [shape: f32[2,5,2,32], index: 0, kind: input, shape index: {}]   ;;  %s325_s1 = inlined_call_operand.vmem [shape: f32[2,5,31], index: 1, kind: output, shape index: {}]  }
   0x1 LB: > { %s257_s7 = sadd.s32 4294967295, %s283_s6   ;;  %p261_p0 = scmp.ge.s32.totalorder %s283_s6, 1  ;;  %s283_s6 = sphi %s296_s6, %s11_s6  }
   0x2   : > { %p87_p1 = scmp.lt.s32.totalorder %s283_s6, 3 }
   0x4   : > { %p88_p2 = pnand %p261_p0, %p87_p1 }
   0x5   : > { %p106_p3 = scmp.lt.s32.totalorder (!%p88_p2), %s257_s7, 1  ;;  %vm140_vm0 = vcmask (!%p88_p2), 254984   ;;  %s285_s12 = smov (!%p88_p2), 127   ;;  %vm118_vm1 = vcmask (!%p88_p2), 246784   ;;  %vm194_vm2 = vcmask (!%p88_p2), 1040384   ;;  %vm196_vm3 = vcmask (!%p88_p2), 1041408  }
   0x6   : > { %91 = sbr.rel (%p88_p2) target bundleno = 158 (0x9e), region = 24  ;;  %vm198_vm4 = vcmask (!%p88_p2), 1042432   ;;  %vm200_vm5 = vcmask (!%p88_p2), 1043456   ;;  %vm202_vm6 = vcmask (!%p88_p2), 249856  }
   0xd   : > { %s327_s7 = smov (!%p106_p3, %s257_s7), 1 }
   0xe   : > { %s267_s8 = smul.u32 10, %s327_s7  ;;  %s263_s13 = sshll.u32 %s327_s7, 3 }
   0xf   : > { %s114_s16 = scalar_lea.vmem %s325_s1, %s263_s13 }
  0x10   : > { %s310_s11 = scalar_lea.vmem %s324_s0, %s267_s8 }
  0x11   : > { %v115_v0 = vld [vmem:[%s310_s11 + $0x2] sm:$0x3]  ;;  %v116_v1 = vld [vmem:[%s310_s11 + $0x4] sm:$0x3]  ;;  %v117_v2 = vld [vmem:[%s310_s11 + $0x8] sm:$0x3] }
  0x12   : > { %v141_v3 = vsel %vm140_vm0, %v115_v0, -inf  ;;  %v155_v4 = vsel %vm140_vm0, %v116_v1, inf  ;;  %v148_v5 = vsel %vm140_vm0, %v117_v2, -inf  ;;  %v264_v21 = vld [vmem:[%s310_s11 + $0x7] sm:$0x1]  ;;  %v119_v26 = vsel %vm118_vm1, %v115_v0, -inf }
  0x13   : > { %v142_v6 = vrot.slane %v141_v3, 4  ;;  %v156_v7 = vrot.slane %v155_v4, 4  ;;  %v149_v8 = vrot.slane %v148_v5, 4  ;;  %v187_v25 = vrot.slane %v264_v21, 5  ;;  %v177_v50 = vld [vmem:[%s310_s11] sm:$0x1] }
  0x14   : > { %v126_v27 = vsel %vm118_vm1, %v117_v2, -inf  ;;  %v120_v28 = vrot.slane %v119_v26, 4  ;;  %v133_v29 = vsel %vm118_vm1, %v116_v1, inf }
  0x15   : > { %v143_v9 = vmax.f32 %v141_v3, %v142_v6  ;;  %v157_v10 = vmin.f32 %v155_v4, %v156_v7  ;;  %v150_v11 = vmax.f32 %v148_v5, %v149_v8  ;;  %v127_v30 = vrot.slane %v126_v27, 4 }
  0x16   : > { %v121_v31 = vmax.f32 %v119_v26, %v120_v28  ;;  %v134_v32 = vrot.slane %v133_v29, 4 }
  0x17   : > { %v144_v12 = vrot.slane %v143_v9, 2  ;;  %v158_v13 = vrot.slane %v157_v10, 2  ;;  %v151_v14 = vrot.slane %v150_v11, 2  ;;  %v128_v33 = vmax.f32 %v126_v27, %v127_v30 }
  0x18   : > { %v122_v34 = vrot.slane %v121_v31, 2  ;;  %v135_v35 = vmin.f32 %v133_v29, %v134_v32 }
  0x19   : > { %v145_v15 = vmax.f32 %v143_v9, %v144_v12  ;;  %v159_v16 = vmin.f32 %v157_v10, %v158_v13  ;;  %v152_v17 = vmax.f32 %v150_v11, %v151_v14  ;;  %v129_v36 = vrot.slane %v128_v33, 2 }
  0x1a   : > { %v123_v37 = vmax.f32 %v121_v31, %v122_v34  ;;  %v136_v38 = vrot.slane %v135_v35, 2 }
  0x1b   : > { %v146_v18 = vrot.slane %v145_v15, 1  ;;  %v160_v19 = vrot.slane %v159_v16, 1  ;;  %v153_v20 = vrot.slane %v152_v17, 1  ;;  %v130_v39 = vmax.f32 %v128_v33, %v129_v36 }
  0x1c   : > { %v124_v40 = vrot.slane %v123_v37, 1  ;;  %v137_v41 = vmin.f32 %v135_v35, %v136_v38 }
  0x1d   : > { %v147_v22 = vmax.f32 %v145_v15, %v146_v18  ;;  %v154_v23 = vmax.f32 %v152_v17, %v153_v20  ;;  %v161_v24 = vmin.f32 %v159_v16, %v160_v19  ;;  %v131_v42 = vrot.slane %v130_v39, 1 }
  0x1e   : > { %v125_v43 = vmax.f32 %v123_v37, %v124_v40  ;;  %v138_v44 = vrot.slane %v137_v41, 1 }
  0x1f   : > { %164 = vrot.lane.b32.xlu0 %v147_v22, %s285_s12  ;;  %166 = vrot.lane.b32.xlu1 %v154_v23, %s285_s12  ;;  %v132_v45 = vmax.f32 %v130_v39, %v131_v42 }
  0x20   : > { %v139_v49 = vmin.f32 %v137_v41, %v138_v44 }
  0x23   : > { %173 = vrot.lane.b32.xlu0 %v161_v24, %s285_s12  ;;  %188 = vrot.lane.b32.xlu1 %v187_v25, %s285_s12 }
  0x91   : > { %v165_v46 = vpop.permute.xlu0 %164  ;;  %v167_v47 = vpop.permute.xlu1 %166 }
  0x92   : > { %v170_v48 = vmax.f32 %v125_v43, %v165_v46  ;;  %v171_v52 = vmax.f32 %v132_v45, %v167_v47 }
  0x94   : > { %v181_v51 = vrot.slane %v170_v48, 7  ;;  %v192_v57 = vrot.slane %v171_v52, 4 }
  0x95   : > { %v174_v53 = vpop.permute.xlu0 %173  ;;  %v189_v58 = vpop.permute.xlu1 %188 }
  0x96   : > { %v195_v54 = vsel %vm194_vm2, %v177_v50, %v181_v51  ;;  %v176_v55 = vmin.f32 %v139_v49, %v174_v53 }
  0x98   : > { %v184_v56 = vrot.slane %v176_v55, 6 }
  0x9a   : > { %v197_v59 = vsel %vm196_vm3, %v195_v54, %v184_v56 }
  0x9b   : > { %v199_v60 = vsel %vm198_vm4, %v197_v59, %v189_v58 }
  0x9c   : > { %v201_v61 = vsel %vm200_vm5, %v199_v60, %v192_v57 }
  0x9d   : > { %203 = vst.msk [vmem:[%s114_s16] sm:$0x1f] %vm202_vm6, %v201_v61 }
  0x9e PF: > { %s11_s6 = sadd.s32 1, %s283_s6  }
  0x9f   : > { %p8_p4 = scmp.ge.s32.totalorder %s11_s6, 4  }
  0xa1   :  { %10 = sbr.rel (!%p8_p4) target bundleno = 1 (0x1), region = 55 }

</bundles_post_ra>
